<compile_context>
chip_gen: v7x
topology: tpu7x:2x2x1
jax: 0.10.0
libtpu: 0.0.40
codegen_flags: <defaults>
</compile_context>

<pallas_src>
import jax
import jax.numpy as jnp
from jax.experimental import pallas as pl
from jax.experimental.pallas import tpu as pltpu

_EPS = 1e-12            # matches torch.nn.functional.normalize default eps
_EPS2 = _EPS * _EPS     # clamp applied to the squared norm (rsqrt path)


def _round_up(x: int, m: int) -> int:
    return ((x + m - 1) // m) * m


def _make_kernel(has_mask: bool):
    """Per-tile kernel.

    Inputs are (3, Bp, tf) slabs: predicted edge1, predicted edge2, and the
    un-normalized GT face normal (axis 0 = x/y/z component planes).  Optional
    mask slab is (3, Bp, tf) with plane k masking cos_{k+1}.  Output is a
    lane-dense (1, 1, tf) per-tile partial sum over batch and the 3 cos terms.
    """

    def kernel(e1_ref, e2_ref, ng_ref, *rest):
        if has_mask:
            mask_ref, out_ref = rest
        else:
            (out_ref,) = rest

        # GT normal: single in-kernel normalize (cross was done in the glue).
        nx, ny, nz = ng_ref[0], ng_ref[1], ng_ref[2]
        inv_n = jax.lax.rsqrt(jnp.maximum(nx * nx + ny * ny + nz * nz, _EPS2))
        nx, ny, nz = nx * inv_n, ny * inv_n, nz * inv_n

        e1x, e1y, e1z = e1_ref[0], e1_ref[1], e1_ref[2]
        e2x, e2y, e2z = e2_ref[0], e2_ref[1], e2_ref[2]

        def cos_abs(x, y, z):
            # |e . n̂| / max(|e|, eps) == |normalize(e) . n̂|  (F.normalize
            # semantics); one EUP rsqrt, no per-component scaling of e.
            dot = x * nx + y * ny + z * nz
            inv = jax.lax.rsqrt(jnp.maximum(x * x + y * y + z * z, _EPS2))
            return jnp.abs(dot) * inv

        c1 = cos_abs(e1x, e1y, e1z)
        c2 = cos_abs(e2x, e2y, e2z)
        # third predicted edge derived in-kernel: p2 - p1 == e2 - e1
        c3 = cos_abs(e2x - e1x, e2y - e1y, e2z - e1z)

        if has_mask:
            total = (c1 * mask_ref[0].astype(jnp.float32)
                     + c2 * mask_ref[1].astype(jnp.float32)
                     + c3 * mask_ref[2].astype(jnp.float32))
        else:
            total = c1 + c2 + c3                              # (Bp, tf)

        # Cheap sublane reduce over batch; lane-dense partial-sum store.
        out_ref[...] = jnp.sum(total, axis=0, keepdims=True).reshape(1, 1, -1)

    return kernel


class NormalVectorLoss:
    """JAX/Pallas port of the PyTorch NormalVectorLoss module."""

    def __init__(self, face, vmem_input_budget_bytes: int = 16 << 20):
        self.face = jnp.asarray(face, dtype=jnp.int32)     # (F, 3)
        self.vmem_input_budget = int(vmem_input_budget_bytes)

    def __call__(self, coord_out, coord_gt, is_valid=None):
        face = self.face
        B, V, _ = coord_out.shape
        F = int(face.shape[0])
        has_mask = is_valid is not None

        Bp = _round_up(B, 8)                                # sublane-aligned

        # ---- lane tile from VMEM budget (double-buffered input streams) ----
        n_streams = 4 if has_mask else 3
        bytes_per_lane = 2 * n_streams * 3 * Bp * 4         # worst case (f32)
        tf = (self.vmem_input_budget // max(bytes_per_lane, 1)) // 128 * 128
        tf = max(128, min(tf, 2048))
        f_full = _round_up(F, 128)
        tf = min(tf, f_full)
        if f_full >= 256:
            # keep >= 2 tiles so both v7x TensorCores get work on big meshes
            tf = min(tf, max(128, _round_up(-(-F // 2), 128)))
        n_tiles = -(-F // tf)
        Fp = n_tiles * tf

        # ---- pad the face TABLE (identical indices -> exactly-zero edges,
        #      exactly-zero cos), instead of jnp.pad-ing every gathered slab.
        if Fp != F:
            face_p = jnp.concatenate(
                [face, jnp.zeros((Fp - F, 3), jnp.int32)], axis=0)
        else:
            face_p = face

        def gathered_edges(coord):
            # (B, V, 3) -> zero-pad batch on the tiny coord tensor, one tiny
            # transpose to component-major (3, Bp, V), then gather faces along
            # the lane axis with the edge subtraction fused into the gather
            # consumer.  Result: two (3, Bp, Fp) slabs, no extra pad pass.
            c = coord.astype(jnp.float32)
            if Bp != B:
                c = jnp.pad(c, ((0, Bp - B), (0, 0), (0, 0)))
            c = jnp.transpose(c, (2, 0, 1))                 # (3, Bp, V)
            p0 = c[:, :, face_p[:, 0]]
            p1 = c[:, :, face_p[:, 1]]
            p2 = c[:, :, face_p[:, 2]]
            return p1 - p0, p2 - p0

        e1o, e2o = gathered_edges(coord_out)
        g1, g2 = gathered_edges(coord_gt)
        # GT face normal in the glue (cross of raw GT edges, fused elementwise
        # with the gather): one streamed slab instead of two GT edge slabs.
        ngt = jnp.stack([g1[1] * g2[2] - g1[2] * g2[1],
                         g1[2] * g2[0] - g1[0] * g2[2],
                         g1[0] * g2[1] - g1[1] * g2[0]], axis=0)

        inputs = [e1o, e2o, ngt]

        if has_mask:
            m = jnp.asarray(is_valid)
            # bf16 is exact for bool / small-int validity masks (halves the
            # mask HBM stream); general float weights stay f32.
            mask_dtype = (jnp.bfloat16
                          if (m.dtype == jnp.bool_
                              or jnp.issubdtype(m.dtype, jnp.integer))
                          else jnp.float32)
            m = jnp.broadcast_to(m, (B, 3 * F, 1)).reshape(B, 3, F)
            m = jnp.transpose(m, (1, 0, 2)).astype(mask_dtype)   # (3, B, F)
            m = jnp.pad(m, ((0, 0), (0, Bp - B), (0, Fp - F)))
            inputs.append(m)

        slab_spec = pl.BlockSpec((3, Bp, tf), lambda f: (0, 0, f))
        vmem_limit = int(max(32 << 20,
                             bytes_per_lane * tf + 8 * tf * 4 + (1 << 20)))

        partials = pl.pallas_call(
            _make_kernel(has_mask),
            out_shape=jax.ShapeDtypeStruct((n_tiles, 1, tf), jnp.float32),
            grid_spec=pltpu.PrefetchScalarGridSpec(
                num_scalar_prefetch=0,
                grid=(n_tiles,),
                in_specs=[slab_spec] * len(inputs),
                out_specs=pl.BlockSpec((1, 1, tf), lambda f: (f, 0, 0)),
            ),
            compiler_params=pltpu.CompilerParams(
                dimension_semantics=("parallel",),
                vmem_limit_bytes=vmem_limit),
        )(*inputs)

        # torch.mean over (B, 3F, 1): padded faces / padded batch rows
        # contribute exactly 0.  The masked mean still divides by B*3F (mean
        # after multiply), matching the torch module.
        return jnp.sum(partials) / jnp.float32(B * 3 * F)


def _reference(coord_out, coord_gt, face, is_valid=None):
    """Pure-JAX reference mirroring the PyTorch forward."""
    def normalize(v):
        n = jnp.linalg.norm(v, axis=2, keepdims=True)
        return v / jnp.maximum(n, _EPS)

    v1o = normalize(coord_out[:, face[:, 1], :] - coord_out[:, face[:, 0], :])
    v2o = normalize(coord_out[:, face[:, 2], :] - coord_out[:, face[:, 0], :])
    v3o = normalize(coord_out[:, face[:, 2], :] - coord_out[:, face[:, 1], :])
    v1g = normalize(coord_gt[:, face[:, 1], :] - coord_gt[:, face[:, 0], :])
    v2g = normalize(coord_gt[:, face[:, 2], :] - coord_gt[:, face[:, 0], :])
    ng = normalize(jnp.cross(v1g, v2g, axis=2))
    cos1 = jnp.abs(jnp.sum(v1o * ng, 2, keepdims=True))
    cos2 = jnp.abs(jnp.sum(v2o * ng, 2, keepdims=True))
    cos3 = jnp.abs(jnp.sum(v3o * ng, 2, keepdims=True))
    loss = jnp.concatenate((cos1, cos2, cos3), 1)
    if is_valid is not None:
        loss = loss * is_valid
    return jnp.mean(loss)


if __name__ == "__main__":
    key = jax.random.PRNGKey(0)
    k1, k2, k3, k4 = jax.random.split(key, 4)

    B, V, Fn = 2, 32, 20
    coord_out = jax.random.normal(k1, (B, V, 3), dtype=jnp.float32)
    coord_gt = jax.random.normal(k2, (B, V, 3), dtype=jnp.float32)
    face = jax.random.randint(k3, (Fn, 3), 0, V, dtype=jnp.int32)
    is_valid = (jax.random.uniform(k4, (B, 3 * Fn, 1)) > 0.3).astype(jnp.float32)

    loss_mod = NormalVectorLoss(face)

    # Unmasked path (kernel compiled with no mask stream).
    loss = jax.block_until_ready(loss_mod(coord_out, coord_gt))
    ref = _reference(coord_out, coord_gt, face)
    assert jnp.allclose(loss, ref, rtol=1e-5, atol=1e-5), (loss, ref)

    # Masked path.
    loss_m = jax.block_until_ready(loss_mod(coord_out, coord_gt, is_valid))
    ref_m = _reference(coord_out, coord_gt, face, is_valid)
    assert jnp.allclose(loss_m, ref_m, rtol=1e-5, atol=1e-5), (loss_m, ref_m)

    print("KERNEL_OK")
</pallas_src>

<mosaic_0001>
module attributes {stable_mosaic.version = 11 : i64} {
  func.func @kernel(%arg0: i32, %arg1: memref<3x8x128xf32, #tpu.memory_space<vmem>>, %arg2: memref<3x8x128xf32, #tpu.memory_space<vmem>>, %arg3: memref<3x8x128xf32, #tpu.memory_space<vmem>>, %arg4: memref<1x1x128xf32, #tpu.memory_space<vmem>>) attributes {dimension_semantics = [#tpu.dimension_semantics<parallel>], iteration_bounds = array<i64: 1>, scalar_prefetch = 0 : i64, scratch_operands = 0 : i64, tpu.core_type = #tpu.core_type<tc>, window_params = [{transform_indices = @transform_0, window_bounds = array<i64: 3, 8, 128>}, {transform_indices = @transform_1, window_bounds = array<i64: 3, 8, 128>}, {transform_indices = @transform_2, window_bounds = array<i64: 3, 8, 128>}, {transform_indices = @transform_3, window_bounds = array<i64: 1, 1, 128>}]} {
    %c0 = arith.constant 0 : index
    %c0_0 = arith.constant 0 : index
    %c0_1 = arith.constant 0 : index
    %0 = vector.load %arg3[%c0, %c0_0, %c0_1] : memref<3x8x128xf32, #tpu.memory_space<vmem>>, vector<1x8x128xf32>
    %1 = vector.shape_cast %0 : vector<1x8x128xf32> to vector<8x128xf32>
    %c1 = arith.constant 1 : index
    %c0_2 = arith.constant 0 : index
    %c0_3 = arith.constant 0 : index
    %2 = vector.load %arg3[%c1, %c0_2, %c0_3] : memref<3x8x128xf32, #tpu.memory_space<vmem>>, vector<1x8x128xf32>
    %3 = vector.shape_cast %2 : vector<1x8x128xf32> to vector<8x128xf32>
    %c2 = arith.constant 2 : index
    %c0_4 = arith.constant 0 : index
    %c0_5 = arith.constant 0 : index
    %4 = vector.load %arg3[%c2, %c0_4, %c0_5] : memref<3x8x128xf32, #tpu.memory_space<vmem>>, vector<1x8x128xf32>
    %5 = vector.shape_cast %4 : vector<1x8x128xf32> to vector<8x128xf32>
    %6 = arith.mulf %1, %1 : vector<8x128xf32>
    %7 = arith.mulf %3, %3 : vector<8x128xf32>
    %8 = arith.addf %6, %7 : vector<8x128xf32>
    %9 = arith.mulf %5, %5 : vector<8x128xf32>
    %10 = arith.addf %8, %9 : vector<8x128xf32>
    %cst = arith.constant 1.000000e-24 : f32
    %11 = vector.broadcast %cst : f32 to vector<8x128xf32>
    %12 = arith.maximumf %10, %11 : vector<8x128xf32>
    %13 = math.rsqrt %12 : vector<8x128xf32>
    %14 = arith.mulf %1, %13 : vector<8x128xf32>
    %15 = arith.mulf %3, %13 : vector<8x128xf32>
    %16 = arith.mulf %5, %13 : vector<8x128xf32>
    %c0_6 = arith.constant 0 : index
    %c0_7 = arith.constant 0 : index
    %c0_8 = arith.constant 0 : index
    %17 = vector.load %arg1[%c0_6, %c0_7, %c0_8] : memref<3x8x128xf32, #tpu.memory_space<vmem>>, vector<1x8x128xf32>
    %18 = vector.shape_cast %17 : vector<1x8x128xf32> to vector<8x128xf32>
    %c1_9 = arith.constant 1 : index
    %c0_10 = arith.constant 0 : index
    %c0_11 = arith.constant 0 : index
    %19 = vector.load %arg1[%c1_9, %c0_10, %c0_11] : memref<3x8x128xf32, #tpu.memory_space<vmem>>, vector<1x8x128xf32>
    %20 = vector.shape_cast %19 : vector<1x8x128xf32> to vector<8x128xf32>
    %c2_12 = arith.constant 2 : index
    %c0_13 = arith.constant 0 : index
    %c0_14 = arith.constant 0 : index
    %21 = vector.load %arg1[%c2_12, %c0_13, %c0_14] : memref<3x8x128xf32, #tpu.memory_space<vmem>>, vector<1x8x128xf32>
    %22 = vector.shape_cast %21 : vector<1x8x128xf32> to vector<8x128xf32>
    %c0_15 = arith.constant 0 : index
    %c0_16 = arith.constant 0 : index
    %c0_17 = arith.constant 0 : index
    %23 = vector.load %arg2[%c0_15, %c0_16, %c0_17] : memref<3x8x128xf32, #tpu.memory_space<vmem>>, vector<1x8x128xf32>
    %24 = vector.shape_cast %23 : vector<1x8x128xf32> to vector<8x128xf32>
    %c1_18 = arith.constant 1 : index
    %c0_19 = arith.constant 0 : index
    %c0_20 = arith.constant 0 : index
    %25 = vector.load %arg2[%c1_18, %c0_19, %c0_20] : memref<3x8x128xf32, #tpu.memory_space<vmem>>, vector<1x8x128xf32>
    %26 = vector.shape_cast %25 : vector<1x8x128xf32> to vector<8x128xf32>
    %c2_21 = arith.constant 2 : index
    %c0_22 = arith.constant 0 : index
    %c0_23 = arith.constant 0 : index
    %27 = vector.load %arg2[%c2_21, %c0_22, %c0_23] : memref<3x8x128xf32, #tpu.memory_space<vmem>>, vector<1x8x128xf32>
    %28 = vector.shape_cast %27 : vector<1x8x128xf32> to vector<8x128xf32>
    %29 = arith.mulf %18, %14 : vector<8x128xf32>
    %30 = arith.mulf %20, %15 : vector<8x128xf32>
    %31 = arith.addf %29, %30 : vector<8x128xf32>
    %32 = arith.mulf %22, %16 : vector<8x128xf32>
    %33 = arith.addf %31, %32 : vector<8x128xf32>
    %34 = arith.mulf %18, %18 : vector<8x128xf32>
    %35 = arith.mulf %20, %20 : vector<8x128xf32>
    %36 = arith.addf %34, %35 : vector<8x128xf32>
    %37 = arith.mulf %22, %22 : vector<8x128xf32>
    %38 = arith.addf %36, %37 : vector<8x128xf32>
    %cst_24 = arith.constant 1.000000e-24 : f32
    %39 = vector.broadcast %cst_24 : f32 to vector<8x128xf32>
    %40 = arith.maximumf %38, %39 : vector<8x128xf32>
    %41 = math.rsqrt %40 : vector<8x128xf32>
    %42 = math.absf %33 : vector<8x128xf32>
    %43 = arith.mulf %42, %41 : vector<8x128xf32>
    %44 = arith.mulf %24, %14 : vector<8x128xf32>
    %45 = arith.mulf %26, %15 : vector<8x128xf32>
    %46 = arith.addf %44, %45 : vector<8x128xf32>
    %47 = arith.mulf %28, %16 : vector<8x128xf32>
    %48 = arith.addf %46, %47 : vector<8x128xf32>
    %49 = arith.mulf %24, %24 : vector<8x128xf32>
    %50 = arith.mulf %26, %26 : vector<8x128xf32>
    %51 = arith.addf %49, %50 : vector<8x128xf32>
    %52 = arith.mulf %28, %28 : vector<8x128xf32>
    %53 = arith.addf %51, %52 : vector<8x128xf32>
    %cst_25 = arith.constant 1.000000e-24 : f32
    %54 = vector.broadcast %cst_25 : f32 to vector<8x128xf32>
    %55 = arith.maximumf %53, %54 : vector<8x128xf32>
    %56 = math.rsqrt %55 : vector<8x128xf32>
    %57 = math.absf %48 : vector<8x128xf32>
    %58 = arith.mulf %57, %56 : vector<8x128xf32>
    %59 = arith.subf %24, %18 : vector<8x128xf32>
    %60 = arith.subf %26, %20 : vector<8x128xf32>
    %61 = arith.subf %28, %22 : vector<8x128xf32>
    %62 = arith.mulf %59, %14 : vector<8x128xf32>
    %63 = arith.mulf %60, %15 : vector<8x128xf32>
    %64 = arith.addf %62, %63 : vector<8x128xf32>
    %65 = arith.mulf %61, %16 : vector<8x128xf32>
    %66 = arith.addf %64, %65 : vector<8x128xf32>
    %67 = arith.mulf %59, %59 : vector<8x128xf32>
    %68 = arith.mulf %60, %60 : vector<8x128xf32>
    %69 = arith.addf %67, %68 : vector<8x128xf32>
    %70 = arith.mulf %61, %61 : vector<8x128xf32>
    %71 = arith.addf %69, %70 : vector<8x128xf32>
    %cst_26 = arith.constant 1.000000e-24 : f32
    %72 = vector.broadcast %cst_26 : f32 to vector<8x128xf32>
    %73 = arith.maximumf %71, %72 : vector<8x128xf32>
    %74 = math.rsqrt %73 : vector<8x128xf32>
    %75 = math.absf %66 : vector<8x128xf32>
    %76 = arith.mulf %75, %74 : vector<8x128xf32>
    %77 = arith.addf %43, %58 : vector<8x128xf32>
    %78 = arith.addf %77, %76 : vector<8x128xf32>
    %cst_27 = arith.constant dense<0.000000e+00> : vector<128xf32>
    %79 = vector.multi_reduction <add>, %78, %cst_27 [0] : vector<8x128xf32> to vector<128xf32>
    %80 = vector.shape_cast %79 : vector<128xf32> to vector<1x128xf32>
    %81 = vector.shape_cast %80 : vector<1x128xf32> to vector<1x1x128xf32>
    %c0_28 = arith.constant 0 : index
    %c0_29 = arith.constant 0 : index
    %c0_30 = arith.constant 0 : index
    %82 = vector.load %arg4[%c0_28, %c0_29, %c0_30] : memref<1x1x128xf32, #tpu.memory_space<vmem>>, vector<1x1x128xf32>
    tpu.vector_store %arg4[%c0_28, %c0_29, %c0_30], %81 {strides = array<i32>} : memref<1x1x128xf32, #tpu.memory_space<vmem>>, vector<1x1x128xf32>,
    return
  }
  func.func @transform_0(%arg0: i32) -> (i32, i32, i32) {
    %c0_i32 = arith.constant 0 : i32
    %c0_i32_0 = arith.constant 0 : i32
    %c0_i32_1 = arith.constant 0 : i32
    return %c0_i32, %c0_i32_0, %arg0 : i32, i32, i32
  }
  func.func @transform_1(%arg0: i32) -> (i32, i32, i32) {
    %c0_i32 = arith.constant 0 : i32
    %c0_i32_0 = arith.constant 0 : i32
    %c0_i32_1 = arith.constant 0 : i32
    return %c0_i32, %c0_i32_0, %arg0 : i32, i32, i32
  }
  func.func @transform_2(%arg0: i32) -> (i32, i32, i32) {
    %c0_i32 = arith.constant 0 : i32
    %c0_i32_0 = arith.constant 0 : i32
    %c0_i32_1 = arith.constant 0 : i32
    return %c0_i32, %c0_i32_0, %arg0 : i32, i32, i32
  }
  func.func @transform_3(%arg0: i32) -> (i32, i32, i32) {
    %c0_i32 = arith.constant 0 : i32
    %c0_i32_0 = arith.constant 0 : i32
    %c0_i32_1 = arith.constant 0 : i32
    return %arg0, %c0_i32, %c0_i32_0 : i32, i32, i32
  }
}

</mosaic_0001>

<bundles_post_ra>
// kernel: tpu_custom_call.1
= control target key start
LH: loop header
LB: loop body
LE: loop exit
PB: predicated region body
PF: predicated region fallthrough
CT: control target
= control target key end

     0   :  { %8 = vsyncpa [#allocation3], 0  ;;  %s349_s0 = inlined_call_operand.hbm [shape: f32[3,8,128], index: 0, kind: input, shape index: {}]   ;;  %s350_s1 = inlined_call_operand.hbm [shape: f32[3,8,128], index: 1, kind: input, shape index: {}]   ;;  %s351_s2 = inlined_call_operand.hbm [shape: f32[3,8,128], index: 2, kind: input, shape index: {}]   ;;  %s352_s3 = inlined_call_operand.hbm [shape: f32[1,1,128], index: 3, kind: output, shape index: {}]  }
   0x1   :  { %9 = vsyncpa [#allocation6], 0 }
   0x2   :  { %10 = vsyncpa [#allocation4], 0  ;;  %s259_s12 = smov [#allocation5]   ;;  %s260_s14 = smov [#allocation2]  }
   0x3   :  { %s28_s13 = sshll.u32 %s259_s12, 4  ;;  %s16_s15 = sshll.u32 %s260_s14, 4  ;;  %s29_s13 = int_to_ptr.vmem [resolvable:$true] %s28_s13  ;;  %s285_s15 = int_to_ptr.vmem [resolvable:$true] %s16_s15 }
   0x4   :  { %s165_s18 = scalar_lea.hbm %s350_s1, 384 }
   0x5   :  { %p166_p0 = scmp.ne.s32.totalorder %s350_s1, %s165_s18  ;;  %p169_p1 = scmp.lt.u32.totalorder %s165_s18, %s350_s1 }
   0x7   :  { %p171_p2 = pnand %p169_p1, %p166_p0 }
   0x9   :  { %174 = shalt.err (!%p171_p2)
}
   0xa   :  { %s175_s23 = scalar_lea.vmem %s29_s13, 384  ;;  %p180_p4 = scmp.lt.s32.totalorder %s29_s13, %s29_s13 }
   0xb   :  { %p176_p3 = scmp.ne.s32.totalorder %s29_s13, %s175_s23  ;;  %p181_p5 = scmp.lt.s32.totalorder %s175_s23, %s175_s23 }
   0xd   :  { %p182_p6 = por %p181_p5, %p180_p4 }
   0xf   :  { %p183_p7 = pnand %p182_p6, %p176_p3 }
  0x11   :  { %186 = shalt.err (!%p183_p7)
}
  0x12   :  { %s261_s24 = smov 128   ;;  %s262_s25 = smov 8  }
  0x13   :  { %34 = dma.hbm_to_vmem [thread:$0]  %s350_s1, 384, %s29_s13, [#allocation6], %s261_s24, %s261_s24, %s262_s25  }
  0x14   :  { %s187_s30 = scalar_lea.hbm %s349_s0, 384 }
  0x15   :  { %p188_p8 = scmp.ne.s32.totalorder %s349_s0, %s187_s30  ;;  %p191_p9 = scmp.lt.u32.totalorder %s187_s30, %s349_s0 }
  0x17   :  { %p193_p10 = pnand %p191_p9, %p188_p8 }
  0x19   :  { %196 = shalt.err (!%p193_p10)
}
  0x1a   :  { %s197_s8 = scalar_lea.vmem %s285_s15, 384  ;;  %p202_p12 = scmp.lt.s32.totalorder %s285_s15, %s285_s15 }
  0x1b   :  { %p198_p11 = scmp.ne.s32.totalorder %s285_s15, %s197_s8  ;;  %p203_p13 = scmp.lt.s32.totalorder %s197_s8, %s197_s8 }
  0x1d   :  { %p204_p0 = por %p203_p13, %p202_p12 }
  0x1f   :  { %p205_p1 = pnand %p204_p0, %p198_p11 }
  0x21   :  { %208 = shalt.err (!%p205_p1)
}
  0x22   :  { %22 = dma.hbm_to_vmem [thread:$0]  %s349_s0, 384, %s285_s15, [#allocation3], %s261_s24, %s261_s24, %s262_s25  }
  0x23   :  { %s263_s10 = smov [#allocation7]   ;;  %s209_s14 = scalar_lea.hbm %s351_s2, 384 }
  0x24   :  { %s40_s11 = sshll.u32 %s263_s10, 4  ;;  %p210_p2 = scmp.ne.s32.totalorder %s351_s2, %s209_s14  ;;  %s41_s11 = int_to_ptr.vmem [resolvable:$true] %s40_s11 }
  0x25   :  { %p213_p3 = scmp.lt.u32.totalorder %s209_s14, %s351_s2 }
  0x27   :  { %p215_p4 = pnand %p213_p3, %p210_p2 }
  0x29   :  { %218 = shalt.err (!%p215_p4)
}
  0x2a   :  { %s219_s20 = scalar_lea.vmem %s41_s11, 384  ;;  %p224_p6 = scmp.lt.s32.totalorder %s41_s11, %s41_s11 }
  0x2b   :  { %p220_p5 = scmp.ne.s32.totalorder %s41_s11, %s219_s20  ;;  %p225_p7 = scmp.lt.s32.totalorder %s219_s20, %s219_s20 }
  0x2d   :  { %p226_p8 = por %p225_p7, %p224_p6 }
  0x2f   :  { %p227_p9 = pnand %p226_p8, %p220_p5 }
  0x31   :  { %230 = shalt.err (!%p227_p9)
}
  0x32   :  { %46 = dma.hbm_to_vmem [thread:$0]  %s351_s2, 384, %s41_s11, [#allocation6], %s261_s24, %s261_s24, %s262_s25  }
  0x33   :  { %253 = dma.done.wait [#allocation3], 384  }
  0x34   :  { %254 = vsyncadd [#allocation3], 4294966912 }
  0x35   :  { %255 = dma.done.wait [#allocation6], 768  }
  0x36   :  { %256 = vsyncadd [#allocation6], 4294966528  ;;  %v56_v0 = vld [vmem:[#allocation7] sm:$0xff]  ;;  %v58_v1 = vld [vmem:[#allocation7 + $0x8] sm:$0xff]  ;;  %s264_s2 = smov [#allocation8]  }
  0x37   :  { %v60_v2 = vld [vmem:[#allocation7 + $0x10] sm:$0xff]  ;;  %v61_v3 = vmul.f32 %v56_v0, %v56_v0  ;;  %v62_v4 = vmul.f32 %v58_v1, %v58_v1  ;;  %v73_v7 = vld [vmem:[#allocation2 + $0x8] sm:$0xff]  ;;  %v75_v8 = vld [vmem:[#allocation2 + $0x10] sm:$0xff]  ;;  %s141_s21 = sshll.u32 %s264_s2, 4  ;;  %s142_s21 = int_to_ptr.vmem [resolvable:$true] %s141_s21 }
  0x38   :  { %v64_v5 = vmul.f32 %v60_v2, %v60_v2  ;;  %v71_v6 = vld [vmem:[#allocation2] sm:$0xff]  ;;  %v76_v9 = vld [vmem:[#allocation5] sm:$0xff]  ;;  %v80_v11 = vld [vmem:[#allocation5 + $0x10] sm:$0xff]  ;;  %v87_v13 = vmul.f32 %v73_v7, %v73_v7  ;;  %v89_v15 = vmul.f32 %v75_v8, %v75_v8  ;;  %s231_s22 = scalar_lea.vmem %s142_s21, 16  ;;  %s235_s23 = scalar_lea.vmem %s142_s21, 32 }
  0x39   :  { %v78_v10 = vld [vmem:[#allocation5 + $0x8] sm:$0xff]  ;;  %v86_v12 = vmul.f32 %v71_v6, %v71_v6  ;;  %v63_v14 = vadd.f32 %v62_v4, %v61_v3  ;;  %v100_v16 = vmul.f32 %v76_v9, %v76_v9  ;;  %v109_v19 = vsub.f32 %v76_v9, %v71_v6  ;;  %p232_p10 = scmp.ne.s32.totalorder %s142_s21, %s231_s22  ;;  %p236_p11 = scmp.lt.s32.totalorder %s142_s21, %s142_s21 }
  0x3a   :  { %v101_v17 = vmul.f32 %v78_v10, %v78_v10  ;;  %v110_v20 = vsub.f32 %v78_v10, %v73_v7  ;;  %v111_v21 = vsub.f32 %v80_v11, %v75_v8  ;;  %v103_v24 = vmul.f32 %v80_v11, %v80_v11  ;;  %p237_p12 = scmp.lt.s32.totalorder %s235_s23, %s231_s22 }
  0x3b   :  { %v88_v18 = vadd.f32 %v87_v13, %v86_v12  ;;  %v65_v22 = vadd.f32 %v64_v5, %v63_v14  ;;  %v117_v25 = vmul.f32 %v109_v19, %v109_v19 }
  0x3c   :  { %v102_v23 = vadd.f32 %v101_v17, %v100_v16  ;;  %v118_v26 = vmul.f32 %v110_v20, %v110_v20  ;;  %v120_v27 = vmul.f32 %v111_v21, %v111_v21  ;;  %p238_p13 = por %p237_p12, %p236_p11 }
  0x3d   :  { %v66_v28 = vmax.f32 %v65_v22, 1e-24  ;;  %v90_v29 = vadd.f32 %v89_v15, %v88_v18 }
  0x3e   :  { %v119_v30 = vadd.f32 %v118_v26, %v117_v25  ;;  %v104_v31 = vadd.f32 %v103_v24, %v102_v23  ;;  %p239_p0 = pnand %p238_p13, %p232_p10 }
  0x3f   :  { %157 = vrsqrt.f32 %v66_v28  ;;  %v91_v33 = vmax.f32 %v90_v29, 1e-24 }
  0x40   :  { %v121_v32 = vadd.f32 %v120_v27, %v119_v30  ;;  %v105_v34 = vmax.f32 %v104_v31, 1e-24 }
  0x41   :  { %159 = vrsqrt.f32 %v91_v33 }
  0x42   :  { %v122_v35 = vmax.f32 %v121_v32, 1e-24  ;;  %161 = vrsqrt.f32 %v105_v34 }
  0x44   :  { %163 = vrsqrt.f32 %v122_v35 }
  0x49   :  { %v158_v36 = vpop.eup %157 }
  0x4a   :  { %v68_v37 = vmul.f32 %v158_v36, %v56_v0  ;;  %v69_v38 = vmul.f32 %v158_v36, %v58_v1  ;;  %v70_v39 = vmul.f32 %v158_v36, %v60_v2 }
  0x4b   :  { %v160_v52 = vpop.eup %159 }
  0x4c   :  { %v81_v40 = vmul.f32 %v71_v6, %v68_v37  ;;  %v82_v41 = vmul.f32 %v73_v7, %v69_v38  ;;  %v84_v42 = vmul.f32 %v75_v8, %v70_v39  ;;  %v95_v43 = vmul.f32 %v76_v9, %v68_v37  ;;  %v162_v54 = vpop.eup %161 }
  0x4d   :  { %v96_v44 = vmul.f32 %v78_v10, %v69_v38  ;;  %v98_v45 = vmul.f32 %v80_v11, %v70_v39  ;;  %v112_v46 = vmul.f32 %v109_v19, %v68_v37  ;;  %v113_v47 = vmul.f32 %v110_v20, %v69_v38 }
  0x4e   :  { %v83_v48 = vadd.f32 %v82_v41, %v81_v40  ;;  %v115_v49 = vmul.f32 %v111_v21, %v70_v39  ;;  %v164_v57 = vpop.eup %163 }
  0x4f   :  { %v97_v50 = vadd.f32 %v96_v44, %v95_v43  ;;  %v114_v51 = vadd.f32 %v113_v47, %v112_v46 }
  0x50   :  { %v85_v53 = vadd.f32 %v84_v42, %v83_v48 }
  0x51   :  { %v99_v55 = vadd.f32 %v98_v45, %v97_v50  ;;  %v116_v56 = vadd.f32 %v115_v49, %v114_v51 }
  0x52   :  { %v93_v58 = vand.u32 2147483647, %v85_v53 }
  0x53   :  { %v107_v59 = vand.u32 2147483647, %v99_v55  ;;  %v124_v60 = vand.u32 2147483647, %v116_v56 }
  0x54   :  { %v94_v61 = vmul.f32 %v160_v52, %v93_v58 }
  0x55   :  { %v108_v62 = vmul.f32 %v162_v54, %v107_v59  ;;  %v125_v63 = vmul.f32 %v164_v57, %v124_v60 }
  0x57   :  { %v126_v0 = vadd.f32 %v108_v62, %v94_v61 }
  0x59   :  { %v127_v1 = vadd.f32 %v126_v0, %v125_v63 }
  0x5b   :  { %v128_v2 = vrot.slane %v127_v1, 4 }
  0x5d   :  { %v129_v3 = vadd.f32 %v128_v2, %v127_v1 }
  0x5f   :  { %v130_v4 = vrot.slane %v129_v3, 2 }
  0x61   :  { %v131_v5 = vadd.f32 %v130_v4, %v129_v3 }
  0x63   :  { %v132_v6 = vrot.slane %v131_v5, 1 }
  0x65   :  { %v133_v7 = vadd.f32 %v132_v6, %v131_v5 }
  0x67   :  { %134 = vst [vmem:[#allocation8] sm:$0x1] %v133_v7 }
  0x68   :  { %242 = shalt.err (!%p239_p0)
}
  0x69   :  { %s243_s26 = scalar_lea.hbm %s352_s3, 16 }
  0x6a   :  { %p244_p1 = scmp.ne.s32.totalorder %s352_s3, %s243_s26  ;;  %p247_p2 = scmp.lt.u32.totalorder %s243_s26, %s352_s3 }
  0x6c   :  { %p249_p3 = pnand %p247_p2, %p244_p1 }
  0x6e   :  { %252 = shalt.err (!%p249_p3)
}
  0x6f   :  { %144 = dma.vmem_to_hbm [thread:$0]  %s142_s21, 16, %s352_s3, [#allocation4]  }
  0x70   :  { %257 = dma.done.wait [#allocation4], 16  }
  0x71   :  { %258 = vsyncadd [#allocation4], 4294967280 }
  0x72   :  { %148 = vsyncpa [#allocation3], 1 }
  0x73   :  { %149 = vsyncpa [#allocation6], 1 }
  0x74   :  { %150 = vsyncpa [#allocation4], 1 }

</bundles_post_ra>
